<compile_context>
chip_gen: v5e
topology: v5e:2x2
jax: 0.10.0
libtpu: 0.0.40
codegen_flags: <defaults>
</compile_context>

<pallas_src>
import jax
import jax.numpy as jnp
from jax.experimental import pallas as pl
from jax.experimental.pallas import tpu as pltpu

H = 32                      # hidden_size
V = 16                      # output_size (vocab)
LANES = 128                 # 4*H == 128: fused gate lanes fill one vreg exactly
EMB_BASE = 104              # embedding table rows start here (multiple of 8)
SLAB_ROWS = EMB_BASE + V    # 120


def decoder_kernel(toks_ref, slab_ref, h0_ref, out_ref, h_scratch):
    """One decode step per grid iteration; hidden carried in VMEM scratch.

    toks_ref:  (T,) int32 in SMEM (scalar prefetch)
    slab_ref:  (120, 128) f32, VMEM-resident:
                 rows 0:2H    fused GRU weight  [x-part rows | h-part rows]
                              lanes: 0:H=r, H:2H=z, 2H:3H=x·W_in, 3H:4H=h·W_hn
                 rows 2H:3H   W_out^T  (lanes 0:V)
                 row  3H      fused gate bias
                 row  3H+1    out bias (lanes 0:V)
                 rows 104:120 embedding table (lanes 0:H)
    h0_ref:    (1, H)  initial hidden state
    out_ref:   (1, 1, 128) per-step packed output: lanes 0:V = log_softmax,
                           lanes V:V+H = new hidden
    h_scratch: (1, H)  hidden carry
    """
    f32 = jnp.float32
    t = pl.program_id(0)

    @pl.when(t == 0)
    def _():
        h_scratch[...] = h0_ref[...]

    h = h_scratch[...]                                   # (1, H) previous hidden

    # ---- in-kernel embedding lookup from the resident slab -----------------
    tok = toks_ref[t]
    emb_row = slab_ref[pl.ds(EMB_BASE + tok, 1), :]      # (1, 128)
    x = jnp.maximum(emb_row[:, 0:H], 0.0)                # relu(embedded), (1, H)

    w_gru = slab_ref[0:2 * H, :]                         # (2H, 128)
    w_out = slab_ref[2 * H:3 * H, :]                     # (H, 128)
    b_gru = slab_ref[3 * H:3 * H + 1, :]                 # (1, 128)
    b_out = slab_ref[3 * H + 1:3 * H + 2, :]             # (1, 128)

    # ---- single fused GRU matmul (K=2H, N=4H=128) ---------------------------
    xh = jnp.concatenate([x, h], axis=-1)                # (1, 2H); relu on x only
    g = jnp.dot(xh, w_gru, preferred_element_type=f32) + b_gru   # (1, 128)

    # one sigmoid over r|z lanes, tanh form (no division)
    rz = 0.5 * (jnp.tanh(0.5 * g[:, 0:2 * H]) + 1.0)     # (1, 2H)
    r = rz[:, 0:H]
    z = rz[:, H:2 * H]
    # PyTorch GRU: n = tanh(W_in x + b_in + r * (W_hn h + b_hn))
    n = jnp.tanh(g[:, 2 * H:3 * H] + r * g[:, 3 * H:4 * H])
    h_new = (1.0 - z) * n + z * h                        # (1, H)

    # ---- out projection + log_softmax over lanes 0:V (no division) ---------
    o = jnp.dot(h_new, w_out, preferred_element_type=f32) + b_out   # (1, 128)
    lane = jax.lax.broadcasted_iota(jnp.int32, (1, LANES), 1)
    valid = lane < V
    m = jnp.max(jnp.where(valid, o, -jnp.inf), axis=-1, keepdims=True)
    s = jnp.sum(jnp.where(valid, jnp.exp(o - m), 0.0), axis=-1, keepdims=True)
    logp = o[:, 0:V] - (m + jnp.log(s))                  # (1, V)

    # ---- single full-lane (1,128) store -------------------------------------
    packed = jnp.concatenate(
        [logp, h_new, jnp.zeros((1, LANES - V - H), f32)], axis=-1)  # (1, 128)

    h_scratch[...] = h_new
    out_ref[...] = packed.reshape(1, 1, LANES)


def init_params(key):
    ks = jax.random.split(key, 6)

    def unif(k, shape, fan_in):
        b = 1.0 / jnp.sqrt(jnp.float32(fan_in))
        return jax.random.uniform(k, shape, jnp.float32, -b, b)

    p = {
        "embedding": jax.random.normal(ks[0], (V, H), jnp.float32),  # nn.Embedding(V, H)
        "w_ih": unif(ks[1], (3 * H, H), H),                          # GRU weight_ih_l0 (r|z|n)
        "w_hh": unif(ks[2], (3 * H, H), H),                          # GRU weight_hh_l0
        "b_ih": unif(ks[3], (3 * H,), H),
        "b_hh": unif(ks[4], (3 * H,), H),
        "out_w": unif(ks[5], (V, H), H),                             # nn.Linear(H, V)
        "out_b": jnp.zeros((V,), jnp.float32),
    }

    w_ih, w_hh = p["w_ih"], p["w_hh"]
    slab = jnp.zeros((SLAB_ROWS, LANES), jnp.float32)
    # fused GRU weight: x-part rows 0:H
    slab = slab.at[0:H, 0:H].set(w_ih[0:H, :].T)                  # W_ir^T
    slab = slab.at[0:H, H:2 * H].set(w_ih[H:2 * H, :].T)          # W_iz^T
    slab = slab.at[0:H, 2 * H:3 * H].set(w_ih[2 * H:3 * H, :].T)  # W_in^T
    # fused GRU weight: h-part rows H:2H
    slab = slab.at[H:2 * H, 0:H].set(w_hh[0:H, :].T)              # W_hr^T
    slab = slab.at[H:2 * H, H:2 * H].set(w_hh[H:2 * H, :].T)      # W_hz^T
    slab = slab.at[H:2 * H, 3 * H:4 * H].set(w_hh[2 * H:3 * H, :].T)  # W_hn^T
    # output projection rows 2H:3H
    slab = slab.at[2 * H:3 * H, 0:V].set(p["out_w"].T)
    # fused gate bias row 3H
    b_gate = jnp.zeros((LANES,), jnp.float32)
    b_gate = b_gate.at[0:2 * H].set(p["b_ih"][0:2 * H] + p["b_hh"][0:2 * H])
    b_gate = b_gate.at[2 * H:3 * H].set(p["b_ih"][2 * H:3 * H])
    b_gate = b_gate.at[3 * H:4 * H].set(p["b_hh"][2 * H:3 * H])
    slab = slab.at[3 * H, :].set(b_gate)
    # out bias row 3H+1
    slab = slab.at[3 * H + 1, 0:V].set(p["out_b"])
    # embedding table rows EMB_BASE:EMB_BASE+V
    slab = slab.at[EMB_BASE:EMB_BASE + V, 0:H].set(p["embedding"])
    p["slab"] = slab
    return p


def decode(tokens, hidden, p):
    """Run T decode steps inside one pallas_call (internalized decode loop)."""
    T = int(tokens.shape[0])
    h0 = hidden.reshape(1, H).astype(jnp.float32)

    grid_spec = pltpu.PrefetchScalarGridSpec(
        num_scalar_prefetch=1,                              # tokens -> SMEM
        grid=(T,),
        in_specs=[
            pl.BlockSpec((SLAB_ROWS, LANES), lambda t, toks: (0, 0)),  # resident slab
            pl.BlockSpec((1, H), lambda t, toks: (0, 0)),              # initial hidden
        ],
        out_specs=pl.BlockSpec((1, 1, LANES), lambda t, toks: (t, 0, 0)),
        scratch_shapes=[pltpu.VMEM((1, H), jnp.float32)],   # hidden carry
    )
    packed = pl.pallas_call(
        decoder_kernel,
        grid_spec=grid_spec,
        out_shape=jax.ShapeDtypeStruct((T, 1, LANES), jnp.float32),
        compiler_params=pltpu.CompilerParams(
            dimension_semantics=("arbitrary",)),            # steps are sequential
    )(tokens.astype(jnp.int32), p["slab"], h0)

    packed = packed.reshape(T, LANES)
    logp = packed[:, 0:V]                                   # (T, V) per-step log-probs
    h_final = packed[T - 1, V:V + H].reshape(1, 1, H)       # final GRU hidden
    return logp, h_final


def decoder_forward(token, hidden, p):
    """Module-equivalent single decode step: (input, hidden) -> (output, hidden)."""
    logp, h_new = decode(jnp.reshape(token, (1,)), hidden, p)
    return logp, h_new                                      # (1, V), (1, 1, H)


# ----------------------------- references -----------------------------------
def reference_forward(token, hidden, p):
    def sig(v):
        return 1.0 / (1.0 + jnp.exp(-v))

    emb = p["embedding"][token].reshape(1, H)
    x = jnp.maximum(emb, 0.0)
    h = hidden.reshape(1, H)
    gi = x @ p["w_ih"].T + p["b_ih"]
    gh = h @ p["w_hh"].T + p["b_hh"]
    r = sig(gi[:, 0:H] + gh[:, 0:H])
    z = sig(gi[:, H:2 * H] + gh[:, H:2 * H])
    n = jnp.tanh(gi[:, 2 * H:] + r * gh[:, 2 * H:])
    h_new = (1.0 - z) * n + z * h
    o = h_new @ p["out_w"].T + p["out_b"]
    logp = jax.nn.log_softmax(o, axis=-1)
    return logp, h_new.reshape(1, 1, H)


def reference_decode(tokens, hidden, p):
    def step(h, tok):
        logp, h_new = reference_forward(tok, h, p)
        return h_new, logp[0]

    h_final, logps = jax.lax.scan(step, hidden, tokens)
    return logps, h_final


if __name__ == "__main__":
    key = jax.random.PRNGKey(0)
    kp, kh, kt = jax.random.split(key, 3)

    params = init_params(kp)
    hidden = jax.random.normal(kh, (1, 1, H), jnp.float32) * 0.1  # previous hidden

    # --- single step: exactly the module's forward(input, hidden) ------------
    token = jnp.array(3, dtype=jnp.int32)
    outs = jax.block_until_ready(decoder_forward(token, hidden, params))
    refs = reference_forward(token, hidden, params)
    for got, want in zip(outs, refs):
        assert got.shape == want.shape, (got.shape, want.shape)
        assert jnp.allclose(got, want, atol=1e-5, rtol=1e-5), (
            float(jnp.max(jnp.abs(got - want))))

    # --- internalized decode loop: T steps in one pallas_call ----------------
    T = 8
    tokens = jax.random.randint(kt, (T,), 0, V, dtype=jnp.int32)
    logp_all, h_final = jax.block_until_ready(decode(tokens, hidden, params))
    ref_logp, ref_h = reference_decode(tokens, hidden, params)
    assert logp_all.shape == ref_logp.shape and h_final.shape == ref_h.shape
    assert jnp.allclose(logp_all, ref_logp, atol=2e-5, rtol=2e-5), (
        float(jnp.max(jnp.abs(logp_all - ref_logp))))
    assert jnp.allclose(h_final, ref_h, atol=2e-5, rtol=2e-5), (
        float(jnp.max(jnp.abs(h_final - ref_h))))

    print("KERNEL_OK")
</pallas_src>

<mosaic_0001>
module attributes {stable_mosaic.version = 11 : i64} {
  func.func @decoder_kernel(%arg0: i32, %arg1: memref<1xi32, #tpu.memory_space<smem>>, %arg2: memref<120x128xf32, #tpu.memory_space<vmem>>, %arg3: memref<1x32xf32, #tpu.memory_space<vmem>>, %arg4: memref<1x1x128xf32, #tpu.memory_space<vmem>>, %arg5: memref<1x32xf32, #tpu.memory_space<vmem>>) attributes {dimension_semantics = [#tpu.dimension_semantics<arbitrary>], iteration_bounds = array<i64: 1>, scalar_prefetch = 1 : i64, scratch_operands = 1 : i64, tpu.core_type = #tpu.core_type<tc>, window_params = [{pipeline_mode = #tpu.pipeline_mode<synchronous>, transform_indices = @transform_0, window_bounds = array<i64: 120, 128>}, {pipeline_mode = #tpu.pipeline_mode<synchronous>, transform_indices = @transform_1, window_bounds = array<i64: 1, 32>}, {transform_indices = @transform_2, window_bounds = array<i64: 1, 1, 128>}]} {
    %c0_i32 = arith.constant 0 : i32
    %0 = arith.cmpi eq, %arg0, %c0_i32 : i32
    %1 = arith.extui %0 : i1 to i32
    %c0_i32_0 = arith.constant 0 : i32
    %2 = arith.cmpi ne, %1, %c0_i32_0 : i32
    scf.if %2 {
      %c0_24 = arith.constant 0 : index
      %c0_25 = arith.constant 0 : index
      %65 = vector.load %arg3[%c0_24, %c0_25] : memref<1x32xf32, #tpu.memory_space<vmem>>, vector<1x32xf32>
      %c0_26 = arith.constant 0 : index
      %c0_27 = arith.constant 0 : index
      %66 = vector.load %arg5[%c0_26, %c0_27] : memref<1x32xf32, #tpu.memory_space<vmem>>, vector<1x32xf32>
      tpu.vector_store %arg5[%c0_26, %c0_27], %65 {strides = array<i32>} : memref<1x32xf32, #tpu.memory_space<vmem>>, vector<1x32xf32>,
    } else {
    }
    %c0 = arith.constant 0 : index
    %c0_1 = arith.constant 0 : index
    %3 = vector.load %arg5[%c0, %c0_1] : memref<1x32xf32, #tpu.memory_space<vmem>>, vector<1x32xf32>
    %4 = arith.index_cast %arg0 : i32 to index
    %5 = memref.load %arg1[%4] : memref<1xi32, #tpu.memory_space<smem>>
    %c104_i32 = arith.constant 104 : i32
    %6 = arith.addi %c104_i32, %5 : i32
    %7 = arith.index_cast %6 : i32 to index
    %c0_2 = arith.constant 0 : index
    %8 = vector.load %arg2[%7, %c0_2] : memref<120x128xf32, #tpu.memory_space<vmem>>, vector<1x128xf32>
    %9 = vector.extract_strided_slice %8 {offsets = [0, 0], sizes = [1, 32], strides = [1, 1]} : vector<1x128xf32> to vector<1x32xf32>
    %cst = arith.constant 0.000000e+00 : f32
    %10 = vector.broadcast %cst : f32 to vector<1x32xf32>
    %11 = arith.maximumf %9, %10 : vector<1x32xf32>
    %c0_3 = arith.constant 0 : index
    %c0_4 = arith.constant 0 : index
    %12 = vector.load %arg2[%c0_3, %c0_4] : memref<120x128xf32, #tpu.memory_space<vmem>>, vector<64x128xf32>
    %c64 = arith.constant 64 : index
    %c0_5 = arith.constant 0 : index
    %13 = vector.load %arg2[%c64, %c0_5] : memref<120x128xf32, #tpu.memory_space<vmem>>, vector<32x128xf32>
    %c96 = arith.constant 96 : index
    %c0_6 = arith.constant 0 : index
    %14 = vector.load %arg2[%c96, %c0_6] : memref<120x128xf32, #tpu.memory_space<vmem>>, vector<1x128xf32>
    %c97 = arith.constant 97 : index
    %c0_7 = arith.constant 0 : index
    %15 = vector.load %arg2[%c97, %c0_7] : memref<120x128xf32, #tpu.memory_space<vmem>>, vector<1x128xf32>
    %16 = tpu.concatenate %11, %3 in 1 : vector<1x32xf32>, vector<1x32xf32> -> vector<1x64xf32>
    %cst_8 = arith.constant dense<0.000000e+00> : vector<1x128xf32>
    %17 = tpu.matmul %16, %12, %cst_8 {dimension_numbers = #tpu.dot_dimension_numbers<[1], [0], [0], [1], [0, 0, 1, 1], [], []>} : vector<1x64xf32>, vector<64x128xf32>, vector<1x128xf32> -> vector<1x128xf32>
    %18 = arith.addf %17, %14 : vector<1x128xf32>
    %19 = vector.extract_strided_slice %18 {offsets = [0, 0], sizes = [1, 64], strides = [1, 1]} : vector<1x128xf32> to vector<1x64xf32>
    %cst_9 = arith.constant 5.000000e-01 : f32
    %20 = vector.broadcast %cst_9 : f32 to vector<1x64xf32>
    %21 = arith.mulf %20, %19 : vector<1x64xf32>
    %22 = math.tanh %21 : vector<1x64xf32>
    %cst_10 = arith.constant 1.000000e+00 : f32
    %23 = vector.broadcast %cst_10 : f32 to vector<1x64xf32>
    %24 = arith.addf %22, %23 : vector<1x64xf32>
    %cst_11 = arith.constant 5.000000e-01 : f32
    %25 = vector.broadcast %cst_11 : f32 to vector<1x64xf32>
    %26 = arith.mulf %25, %24 : vector<1x64xf32>
    %27 = vector.extract_strided_slice %26 {offsets = [0, 0], sizes = [1, 32], strides = [1, 1]} : vector<1x64xf32> to vector<1x32xf32>
    %28 = vector.extract_strided_slice %26 {offsets = [0, 32], sizes = [1, 32], strides = [1, 1]} : vector<1x64xf32> to vector<1x32xf32>
    %29 = vector.extract_strided_slice %18 {offsets = [0, 64], sizes = [1, 32], strides = [1, 1]} : vector<1x128xf32> to vector<1x32xf32>
    %30 = vector.extract_strided_slice %18 {offsets = [0, 96], sizes = [1, 32], strides = [1, 1]} : vector<1x128xf32> to vector<1x32xf32>
    %31 = arith.mulf %27, %30 : vector<1x32xf32>
    %32 = arith.addf %29, %31 : vector<1x32xf32>
    %33 = math.tanh %32 : vector<1x32xf32>
    %cst_12 = arith.constant 1.000000e+00 : f32
    %34 = vector.broadcast %cst_12 : f32 to vector<1x32xf32>
    %35 = arith.subf %34, %28 : vector<1x32xf32>
    %36 = arith.mulf %35, %33 : vector<1x32xf32>
    %37 = arith.mulf %28, %3 : vector<1x32xf32>
    %38 = arith.addf %36, %37 : vector<1x32xf32>
    %cst_13 = arith.constant dense<0.000000e+00> : vector<1x128xf32>
    %39 = tpu.matmul %38, %13, %cst_13 {dimension_numbers = #tpu.dot_dimension_numbers<[1], [0], [0], [1], [0, 0, 1, 1], [], []>} : vector<1x32xf32>, vector<32x128xf32>, vector<1x128xf32> -> vector<1x128xf32>
    %40 = arith.addf %39, %15 : vector<1x128xf32>
    %41 = tpu.iota {dimensions = array<i32: 1>} : vector<1x128xi32>
    %c16_i32 = arith.constant 16 : i32
    %42 = vector.broadcast %c16_i32 : i32 to vector<1x128xi32>
    %43 = arith.cmpi slt, %41, %42 : vector<1x128xi32>
    %cst_14 = arith.constant 0xFF800000 : f32
    %44 = vector.broadcast %cst_14 : f32 to vector<1x128xf32>
    %45 = arith.select %43, %40, %44 : vector<1x128xi1>, vector<1x128xf32>
    %cst_15 = arith.constant dense<0xFF800000> : vector<1xf32>
    %46 = vector.multi_reduction <maximumf>, %45, %cst_15 [1] : vector<1x128xf32> to vector<1xf32>
    %47 = vector.shape_cast %46 : vector<1xf32> to vector<1x1xf32>
    %48 = vector.broadcast %47 : vector<1x1xf32> to vector<1x128xf32>
    %49 = arith.subf %40, %48 : vector<1x128xf32>
    %50 = math.exp %49 : vector<1x128xf32>
    %cst_16 = arith.constant 0.000000e+00 : f32
    %51 = vector.broadcast %cst_16 : f32 to vector<1x128xf32>
    %52 = arith.select %43, %50, %51 : vector<1x128xi1>, vector<1x128xf32>
    %cst_17 = arith.constant dense<0.000000e+00> : vector<1xf32>
    %53 = vector.multi_reduction <add>, %52, %cst_17 [1] : vector<1x128xf32> to vector<1xf32>
    %54 = vector.shape_cast %53 : vector<1xf32> to vector<1x1xf32>
    %55 = vector.extract_strided_slice %40 {offsets = [0, 0], sizes = [1, 16], strides = [1, 1]} : vector<1x128xf32> to vector<1x16xf32>
    %56 = math.log %54 : vector<1x1xf32>
    %57 = arith.addf %47, %56 : vector<1x1xf32>
    %58 = vector.broadcast %57 : vector<1x1xf32> to vector<1x16xf32>
    %59 = arith.subf %55, %58 : vector<1x16xf32>
    %cst_18 = arith.constant 0.000000e+00 : f32
    %60 = vector.broadcast %cst_18 : f32 to vector<1x80xf32>
    %61 = tpu.concatenate %59, %38, %60 in 1 : vector<1x16xf32>, vector<1x32xf32>, vector<1x80xf32> -> vector<1x128xf32>
    %c0_19 = arith.constant 0 : index
    %c0_20 = arith.constant 0 : index
    %62 = vector.load %arg5[%c0_19, %c0_20] : memref<1x32xf32, #tpu.memory_space<vmem>>, vector<1x32xf32>
    tpu.vector_store %arg5[%c0_19, %c0_20], %38 {strides = array<i32>} : memref<1x32xf32, #tpu.memory_space<vmem>>, vector<1x32xf32>,
    %63 = vector.shape_cast %61 : vector<1x128xf32> to vector<1x1x128xf32>
    %c0_21 = arith.constant 0 : index
    %c0_22 = arith.constant 0 : index
    %c0_23 = arith.constant 0 : index
    %64 = vector.load %arg4[%c0_21, %c0_22, %c0_23] : memref<1x1x128xf32, #tpu.memory_space<vmem>>, vector<1x1x128xf32>
    tpu.vector_store %arg4[%c0_21, %c0_22, %c0_23], %63 {strides = array<i32>} : memref<1x1x128xf32, #tpu.memory_space<vmem>>, vector<1x1x128xf32>,
    return
  }
  func.func @transform_0(%arg0: i32, %arg1: memref<1xi32, #tpu.memory_space<smem>>) -> (i32, i32) {
    %c0_i32 = arith.constant 0 : i32
    %c0_i32_0 = arith.constant 0 : i32
    %c0_i32_1 = arith.constant 0 : i32
    return %c0_i32, %c0_i32_0 : i32, i32
  }
  func.func @transform_1(%arg0: i32, %arg1: memref<1xi32, #tpu.memory_space<smem>>) -> (i32, i32) {
    %c0_i32 = arith.constant 0 : i32
    %c0_i32_0 = arith.constant 0 : i32
    %c0_i32_1 = arith.constant 0 : i32
    return %c0_i32, %c0_i32_0 : i32, i32
  }
  func.func @transform_2(%arg0: i32, %arg1: memref<1xi32, #tpu.memory_space<smem>>) -> (i32, i32, i32) {
    %c0_i32 = arith.constant 0 : i32
    %c0_i32_0 = arith.constant 0 : i32
    %c0_i32_1 = arith.constant 0 : i32
    return %arg0, %c0_i32, %c0_i32_0 : i32, i32, i32
  }
}

</mosaic_0001>

<bundles_post_ra>
// kernel: tpu_custom_call.1
= control target key start
LH: loop header
LB: loop body
LE: loop exit
PB: predicated region body
PF: predicated region fallthrough
CT: control target
= control target key end

     0   :  { %9 = vsyncpa [#allocation6], 0  ;;  %s301_s0 = inlined_call_operand.<no memory space> [shape: s32[1], index: 0, kind: input, shape index: {}]   ;;  %s302_s1 = inlined_call_operand.hbm [shape: f32[120,128], index: 1, kind: input, shape index: {}]   ;;  %s303_s2 = inlined_call_operand.vmem [shape: f32[1,32], index: 2, kind: input, shape index: {}]   ;;  %s304_s3 = inlined_call_operand.hbm [shape: f32[1,1,128], index: 3, kind: output, shape index: {}]  }
   0x1   :  { %10 = vsyncpa [#allocation7], 0  ;;  %s15_s14 = sshll.u32 %s302_s1, 4  ;;  %s257_s15 = smov [#allocation5]   ;;  %s16_s14 = int_to_ptr.hbm [resolvable:$true] %s15_s14 }
   0x2   :  { %s17_s16 = sshll.u32 %s257_s15, 4  ;;  %s258_s17 = smov 128   ;;  %s18_s16 = int_to_ptr.vmem [resolvable:$true] %s17_s16 }
   0x3   :  { %s259_s18 = smov 8  }
   0x4   :  { %23 = dma.hbm_to_vmem [thread:$0]  %s16_s14, 1920, %s18_s16, [#allocation6], %s258_s17, %s258_s17, %s259_s18  }
   0x5   :  { %253 = dma.done.wait [#allocation6], 1920  }
   0x6   :  { %254 = vsyncadd [#allocation6], 4294965376  ;;  %vm35_vm0 = vcmask 253952   ;;  %v34_v0 = vld [vmem:[%s303_s2] sm:$0x1]  ;;  %v49_v2 = vld [vmem:[#allocation5 + $0x30] sm:$0xff]  ;;  %v136_v36 = vlaneseq }
   0x7   :  { %v50_v1 = vld [vmem:[#allocation5 + $0x38] sm:$0xff]  ;;  %36 = vst.msk [vmem:[#allocation2] sm:$0x1] %vm35_vm0, %v34_v0  ;;  %v48_v3 = vld [vmem:[#allocation5 + $0x28] sm:$0xff]  ;;  %v47_v4 = vld [vmem:[#allocation5 + $0x20] sm:$0xff]  ;;  %s260_s1 = smov 32  }
   0x8   :  { %76 = vmatpush.msra.mxu0 %v50_v1  ;;  %v46_v5 = vld [vmem:[#allocation5 + $0x18] sm:$0xff]  ;;  %v45_v7 = vld [vmem:[#allocation5 + $0x10] sm:$0xff]  ;;  %v44_v8 = vld [vmem:[#allocation5 + $0x8] sm:$0xff]  ;;  %s183_s22 = scalar_lea.vmem [#allocation5], %s301_s0  ;;  %vm62_vm1 = vcmask 261120   ;;  %vm64_vm2 = vcmask 523264  }
   0x9   :  { %v43_v9 = vld [vmem:[#allocation5] sm:$0xff]  ;;  %s261_s0 = smov 64   ;;  %s262_s23 = smov 96   ;;  %v54_v26 = vld [vmem:[#allocation5 + $0x58] sm:$0xff]  ;;  %v53_v27 = vld [vmem:[#allocation5 + $0x50] sm:$0xff]  ;;  %v137_v37 = vand.u32 127, %v136_v36 }
   0xa   :  { %77 = vmatpush.msra.mxu0 %v49_v2  ;;  %v185_v10 = vld [vmem:[%s183_s22 + $0x68] sm:$0x1]  ;;  %v55_v14 = vld [vmem:[#allocation5 + $0x60] sm:$0x1]  ;;  %128 = vmatpush.msra.mxu1 %v54_v26  ;;  %v52_v28 = vld [vmem:[#allocation5 + $0x48] sm:$0xff]  ;;  %s263_s24 = smov 112  }
   0xb   :  { %v42_v11 = vmax.f32 %v185_v10, 0.0  ;;  %v51_v29 = vld [vmem:[#allocation5 + $0x40] sm:$0xff]  ;;  %vm138_vm3 = vcmp.lt.s32.totalorder %v137_v37, 16  ;;  %vm140_vm4 = vcmask 1040384   ;;  %vm158_vm5 = vcmask 130048   ;;  %s264_s25 = smov [#allocation8]  }
   0xc   :  { %78 = vmatpush.msra.mxu0 %v48_v3  ;;  %129 = vmatpush.msra.mxu1 %v53_v27  ;;  %v56_v38 = vld [vmem:[#allocation5 + $0x61] sm:$0x1]  ;;  %s171_s26 = sshll.u32 %s264_s25, 4  ;;  %s173_s29 = sshll.u32 %s304_s3, 4  ;;  %vm160_vm6 = vcmask 392192   ;;  %s172_s26 = int_to_ptr.vmem [resolvable:$true] %s171_s26  ;;  %s174_s29 = int_to_ptr.hbm [resolvable:$true] %s173_s29 }
   0xe   :  { %79 = vmatpush.msra.mxu0 %v47_v4  ;;  %v196_v6 = vld [vmem:[#allocation2] ss:$0 sm:$0xff]  ;;  %130 = vmatpush.msra.mxu1 %v52_v28 }
   0xf   :  { %59 = vrot.lane.b32.xlu0 %v196_v6, %s260_s1 }
  0x10   :  { %80 = vmatpush.msra.mxu0 %v46_v5  ;;  %131 = vmatpush.msra.mxu1 %v51_v29 }
  0x12   :  { %81 = vmatpush.msra.mxu0 %v45_v7 }
  0x14   :  { %82 = vmatpush.msra.mxu0 %v44_v8 }
  0x16   :  { %83 = vmatpush.msra.mxu0 %v43_v9 }
  0x81   :  { %v60_v12 = vpop.permute.xlu0 %59 }
  0x82   :  { %v63_v13 = vsel %vm62_vm1, %v42_v11, %v60_v12 }
  0x83   :  { %186 = vmatmul.msk.f32.vlgmr.msra.gmra.mxu0 %vm64_vm2, %v63_v13 }
 0x100   :  { %v85_v15 = vpop.f32.mrf.mxu0 }
 0x101   :  { %v86_v16 = vadd.f32 %v85_v15, %v55_v14 }
 0x103   :  { %93 = vrot.lane.b32.xlu0 %v86_v16, %s260_s1  ;;  %v88_v17 = vmul.f32 0.5, %v86_v16 }
 0x105   :  { %197 = vtanh.f32 %v88_v17 }
 0x10b   :  { %v198_v18 = vpop.eup %197 }
 0x10c   :  { %v90_v19 = vadd.f32 1.0, %v198_v18 }
 0x10e   :  { %v91_v20 = vmul.f32 0.5, %v90_v19 }
 0x110   :  { %v103_v30 = vsub.f32 1.0, %v91_v20  ;;  %v109_v32 = vmul.f32 %v91_v20, %v60_v12 }
 0x175   :  { %v94_v21 = vpop.permute.xlu0 %93 }
 0x176   :  { %v96_v22 = vmul.f32 %v94_v21, %v91_v20 }
 0x178   :  { %98 = vrot.lane.b32.xlu1 %v96_v22, %s261_s0 }
 0x1ea   :  { %v99_v23 = vpop.permute.xlu1 %98 }
 0x1eb   :  { %v101_v24 = vadd.f32 %v99_v23, %v86_v16 }
 0x1ed   :  { %199 = vtanh.f32 %v101_v24 }
 0x1f3   :  { %v200_v25 = vpop.eup %199 }
 0x1f4   :  { %105 = vrot.lane.b32.xlu1 %v200_v25, %s262_s23 }
 0x266   :  { %v106_v31 = vpop.permute.xlu1 %105 }
 0x267   :  { %v108_v33 = vmul.f32 %v106_v31, %v103_v30 }
 0x269   :  { %v110_v34 = vadd.f32 %v109_v32, %v108_v33 }
 0x26b   :  { %155 = vrot.lane.b32.xlu1 %v110_v34, %s263_s24  ;;  %112 = vrot.lane.b32.xlu2 %v110_v34, %s262_s23 }
 0x2c5   :  { %v113_v35 = vpop.permute.xlu2 %112 }
 0x2c6   :  { %164 = vst.msk [vmem:[#allocation2] sm:$0x1] %vm35_vm0, %v113_v35  ;;  %187 = vmatmul.msk.f32.vlgmr.msra.gmra.mxu1 %vm62_vm1, %v113_v35 }
 0x2dd   :  { %v156_v54 = vpop.permute.xlu1 %155 }
 0x343   :  { %v133_v39 = vpop.f32.mrf.mxu1 }
 0x344   :  { %v134_v40 = vadd.f32 %v133_v39, %v56_v38 }
 0x346   :  { %v139_v41 = vsel %vm138_vm3, %v134_v40, -inf }
 0x347   :  { %v141_v42 = vsel %vm140_vm4, %v139_v41, -inf }
 0x348   :  { %142 = vmax.xlane.f32.xlu2 %v141_v42 }
 0x3bb   :  { %v143_v43 = vpop.xlane.xlu2 %142 }
 0x3bc   :  { %v144_v44 = vsub.f32 %v134_v40, %v143_v43 }
 0x3be   :  { %v145_v45 = vmul.f32 1.442695, %v144_v44 }
 0x3c0   :  { %201 = vpow2.f32 %v145_v45 }
 0x3c6   :  { %v202_v46 = vpop.eup %201 }
 0x3c7   :  { %v147_v47 = vsel %vm138_vm3, %v202_v46, 0.0 }
 0x3c8   :  { %v148_v48 = vsel %vm140_vm4, %v147_v47, 0.0 }
 0x3c9   :  { %149 = vadd.xlane.f32.xlu0 %v148_v48 }
 0x43c   :  { %v150_v49 = vpop.xlane.xlu0 %149 }
 0x43d   :  { %203 = vlog2.f32 %v150_v49 }
 0x443   :  { %v204_v50 = vpop.eup %203 }
 0x444   :  { %v152_v51 = vmul.f32 0.6931472, %v204_v50 }
 0x446   :  { %v153_v52 = vadd.f32 %v152_v51, %v143_v43 }
 0x448   :  { %v154_v53 = vsub.f32 %v134_v40, %v153_v52 }
 0x44a   :  { %v159_v55 = vsel %vm158_vm5, %v154_v53, %v156_v54 }
 0x44b   :  { %v161_v56 = vsel %vm160_vm6, %v159_v55, 0.0 }
 0x44c   :  { %165 = vst [vmem:[#allocation8] sm:$0x1] %v161_v56 }
 0x44d   :  { %176 = dma.vmem_to_hbm [thread:$0]  %s172_s26, 16, %s174_s29, [#allocation7]  }
 0x44e   :  { %255 = dma.done.wait [#allocation7], 16  }
 0x44f   :  { %256 = vsyncadd [#allocation7], 4294967280 }
 0x450   :  { %181 = vsyncpa [#allocation6], 1 }
 0x451   :  { %182 = vsyncpa [#allocation7], 1 }

</bundles_post_ra>
